<compile_context>
chip_gen: v6e
topology: v6e:2x2x1
jax: 0.10.0
libtpu: 0.0.40
codegen_flags: <defaults>
</compile_context>

<pallas_src>
import functools

import jax
import jax.numpy as jnp
from jax.experimental import pallas as pl
from jax.experimental.pallas import tpu as pltpu


def _cdiv(a, b):
    return (a + b - 1) // b


def _round_up(x, m):
    return _cdiv(x, m) * m


# --------------------------------------------------------------------------
# Pallas kernel: sigmoid( sum_rows(x_tile * w) + cat_lut_row + bias ) per
# batch tile, plus a per-tile partial sum of the sigmoid for the global mean.
# --------------------------------------------------------------------------
def _adversary_kernel(*refs, has_off, batch, tile_b):
    if has_off:
        w_ref, b_ref, off_ref, x_ref, s_ref, psum_ref = refs
    else:
        w_ref, b_ref, x_ref, s_ref, psum_ref = refs
        off_ref = None

    prod = x_ref[...] * w_ref[...]                    # (n_rows, TB) VPU multiply
    n_rows = prod.shape[0]
    if n_rows <= 8:
        # single sublane reduce per vreg column (XLU), well under DMA time
        logits = jnp.sum(prod, axis=0, keepdims=True)
    else:
        # VPU pre-accumulation of aligned 8-row groups -> one sublane reduce
        n_full = (n_rows // 8) * 8
        acc = prod[0:8]
        for c in range(8, n_full, 8):
            acc = acc + prod[c:c + 8]
        logits = jnp.sum(acc, axis=0, keepdims=True)
        if n_full < n_rows:
            logits = logits + jnp.sum(prod[n_full:], axis=0, keepdims=True)

    if has_off:
        logits = logits + off_ref[...]                # folded embedding LUT row
    logits = logits + b_ref[0, 0]                     # folded bias (SMEM scalar)

    s = jax.nn.sigmoid(logits)                        # EUP

    # Mask lanes past the true batch (ragged last tile): keeps garbage out of
    # the partial sums; the clipped output store drops those lanes anyway.
    lane = jax.lax.broadcasted_iota(jnp.int32, s.shape, 1)
    valid = (pl.program_id(0) * tile_b + lane) < batch
    s = jnp.where(valid, s, 0.0)

    s_ref[...] = s.astype(s_ref.dtype)                # lane-dense (1, TB) store
    psum_ref[...] = jnp.full(psum_ref.shape, jnp.sum(s), dtype=psum_ref.dtype)


def _pick_tile_b(batch, n_rows, tile_b=None, vmem_budget_bytes=24 * 1024 * 1024):
    """Per-review tile choice: big tiles, >=4 grid steps for large batches,
    2x-buffered working set kept under ~24 MiB (fits v7x's 64 MiB VMEM)."""
    if tile_b is None:
        rows_pad = _round_up(max(n_rows, 1), 8)
        per_lane = (rows_pad + 8 + 8) * 4 * 2         # x + cat row + s, double-buffered
        cap = max(128, (vmem_budget_bytes // per_lane) // 128 * 128)
        tile_b = max(_round_up(_cdiv(batch, 4), 128), 32768)
        tile_b = min(tile_b, cap, 65536)
    if tile_b >= batch:
        return batch                                  # one full block, no ragged lanes
    return tile_b


def adversary_sigmoid_pallas(xT_num, off_row, w_num, bias, *, tile_b=None):
    """Returns (s [1, B] f32, per-tile partial sums [grid_b, 8, 128] f32).

    xT_num : [n_num, B] f32 feature-major numerical inputs.
    off_row: [1, B] f32 or None (summed per-class embedding LUT contributions).
    w_num  : [n_num, 1] f32 folded numerical weight column (resident in VMEM).
    bias   : [1, 1] f32 folded bias (SMEM scalar).
    """
    n_rows, batch = xT_num.shape
    tb = _pick_tile_b(batch, n_rows, tile_b)
    grid_b = _cdiv(batch, tb)
    has_off = off_row is not None

    kernel = functools.partial(
        _adversary_kernel, has_off=has_off, batch=batch, tile_b=tb)

    in_specs = [
        pl.BlockSpec((n_rows, 1), lambda i: (0, 0)),               # resident params
        pl.BlockSpec(memory_space=pltpu.MemorySpace.SMEM),         # bias scalar
    ]
    args = [w_num, bias]
    if has_off:
        in_specs.append(pl.BlockSpec((1, tb), lambda i: (0, i)))   # cat LUT row
        args.append(off_row)
    in_specs.append(pl.BlockSpec((n_rows, tb), lambda i: (0, i)))  # x_num.T stream
    args.append(xT_num)

    s_row, psums = pl.pallas_call(
        kernel,
        grid=(grid_b,),
        in_specs=in_specs,
        out_specs=(
            pl.BlockSpec((1, tb), lambda i: (0, i)),               # lane-dense s
            pl.BlockSpec((1, 8, 128), lambda i: (i, 0, 0)),        # per-tile sums
        ),
        out_shape=(
            jax.ShapeDtypeStruct((1, batch), jnp.float32),
            jax.ShapeDtypeStruct((grid_b, 8, 128), jnp.float32),
        ),
        compiler_params=pltpu.CompilerParams(
            dimension_semantics=("parallel",),    # tiles independent (mean via psums)
            vmem_limit_bytes=40 * 1024 * 1024,
        ),
    )(*args)
    return s_row, psums


# --------------------------------------------------------------------------
# Wrapper: exact fold of Linear chain + embedding tables, kernel call, and the
# tiny global-mean / clamp / +1 epilogue.
# --------------------------------------------------------------------------
def fold_linear_chain(weights, biases):
    """Fold an activation-free Linear chain into one [D_in,1] column + [1,1]
    bias (weights stored pre-transposed as [in, out])."""
    w = weights[0]
    b = biases[0]
    for wi, bi in zip(weights[1:], biases[1:]):
        b = b @ wi + bi
        w = w @ wi
    return w, b


def adversary_forward(x_cat, x_num, tables, weights, biases, *, tile_b=None):
    batch, _ = x_num.shape
    w_fold, b_fold = fold_linear_chain(weights, biases)        # [D,1], [1,1]
    n_cat_feats = sum(int(t.shape[1]) for t in tables)
    w_cat = w_fold[:n_cat_feats]
    w_num = w_fold[n_cat_feats:]                                # [n_num, 1]

    off_row = None
    if x_cat is not None and len(tables) > 0:
        # Fold each embedding table through the chain: per-class scalar LUTs.
        cat_logit = jnp.zeros((batch,), jnp.float32)
        r = 0
        for i, t in enumerate(tables):
            nf = int(t.shape[1])
            lut = (t @ w_cat[r:r + nf])[:, 0]                   # [n_classes_i]
            cat_logit = cat_logit + lut[x_cat[:, i]]
            r += nf
        off_row = cat_logit.reshape(1, batch)

    xT_num = jnp.asarray(x_num, jnp.float32).T                  # [n_num, B]
    bias = jnp.reshape(b_fold, (1, 1)).astype(jnp.float32)

    s_row, psums = adversary_sigmoid_pallas(
        xT_num, off_row, w_num.astype(jnp.float32), bias, tile_b=tile_b)

    total = jnp.sum(psums[:, 0, 0])                             # no re-read of s
    denom = jnp.maximum(total / batch, jnp.float32(1e-4))
    return (s_row[0] / denom + 1.0).reshape(batch, 1)


def adversary_forward_ref(x_cat, x_num, tables, weights, biases):
    """Pure-JAX reference (unfolded chain), matching the PyTorch module."""
    if x_cat is not None and len(tables) > 0:
        cols = [tables[i][x_cat[:, i]] for i in range(len(tables))]
        x = jnp.concatenate(cols + [x_num], axis=1)
    else:
        x = x_num
    h = x
    for w, b in zip(weights, biases):
        h = h @ w + b
    s = jax.nn.sigmoid(h)
    denom = jnp.maximum(jnp.mean(s), 1e-4)
    return s / denom + 1.0


def init_params(key, embedding_size, n_num_cols, n_hidden):
    """Deterministic synthetic parameters matching AdversaryNN.__init__ shapes."""
    tables = []
    for (n_classes, n_features) in embedding_size:
        key, sub = jax.random.split(key)
        tables.append(jax.random.normal(sub, (n_classes, n_features), jnp.float32))
    n_cat_cols = sum(nf for _, nf in embedding_size)
    dims = [n_cat_cols + n_num_cols] + list(n_hidden) + [1]
    weights, biases = [], []
    for d_in, d_out in zip(dims[:-1], dims[1:]):
        key, kw, kb = jax.random.split(key, 3)
        bound = 1.0 / float(d_in) ** 0.5
        weights.append(jax.random.uniform(kw, (d_in, d_out), jnp.float32, -bound, bound))
        biases.append(jax.random.uniform(kb, (1, d_out), jnp.float32, -bound, bound))
    return tables, weights, biases


def _make_inputs(key, embedding_size, n_num_cols, batch):
    k_cat, k_num = jax.random.split(key)
    x_cat = None
    if embedding_size:
        x_cat = jnp.stack(
            [jax.random.randint(jax.random.fold_in(k_cat, i), (batch,), 0, n_classes)
             for i, (n_classes, _) in enumerate(embedding_size)],
            axis=1)
    x_num = jax.random.normal(k_num, (batch, n_num_cols), jnp.float32)
    return x_cat, x_num


if __name__ == "__main__":
    key = jax.random.PRNGKey(0)

    # Model 1: categorical + numerical columns.
    embedding_size = [(5, 3), (7, 4)]
    n_num_cols, n_hidden = 6, [32, 16]
    key, kp, kin1, kin2 = jax.random.split(key, 4)
    tables, weights, biases = init_params(kp, embedding_size, n_num_cols, n_hidden)

    # (a) batch = 256: single full tile.
    x_cat, x_num = _make_inputs(kin1, embedding_size, n_num_cols, batch=256)
    out = jax.block_until_ready(adversary_forward(x_cat, x_num, tables, weights, biases))
    ref = adversary_forward_ref(x_cat, x_num, tables, weights, biases)
    assert out.shape == (256, 1), out.shape
    assert jnp.allclose(out, ref, atol=1e-5, rtol=1e-4)

    # (b) batch = 300 with a forced 128-lane tile: multi-tile grid, ragged last
    #     block, and per-tile partial sums feeding the mean.
    x_cat2, x_num2 = _make_inputs(kin2, embedding_size, n_num_cols, batch=300)
    out2 = jax.block_until_ready(
        adversary_forward(x_cat2, x_num2, tables, weights, biases, tile_b=128))
    ref2 = adversary_forward_ref(x_cat2, x_num2, tables, weights, biases)
    assert out2.shape == (300, 1), out2.shape
    assert jnp.allclose(out2, ref2, atol=1e-5, rtol=1e-4)

    # Model 2: no categorical columns (embedding_size == 0 path).
    key, kp0, kin0 = jax.random.split(key, 3)
    tables0, weights0, biases0 = init_params(kp0, [], 5, [16, 8])
    _, x_num0 = _make_inputs(kin0, [], 5, batch=200)
    out0 = jax.block_until_ready(
        adversary_forward(None, x_num0, tables0, weights0, biases0))
    ref0 = adversary_forward_ref(None, x_num0, tables0, weights0, biases0)
    assert out0.shape == (200, 1), out0.shape
    assert jnp.allclose(out0, ref0, atol=1e-5, rtol=1e-4)

    print("KERNEL_OK")
</pallas_src>

<mosaic_0001>
module attributes {stable_mosaic.version = 11 : i64} {
  func.func @_adversary_kernel(%arg0: i32, %arg1: memref<6x1xf32, #tpu.memory_space<vmem>>, %arg2: memref<1x1xf32, #tpu.memory_space<smem>>, %arg3: memref<1x256xf32, #tpu.memory_space<vmem>>, %arg4: memref<6x256xf32, #tpu.memory_space<vmem>>, %arg5: memref<1x256xf32, #tpu.memory_space<vmem>>, %arg6: memref<1x8x128xf32, #tpu.memory_space<vmem>>) attributes {dimension_semantics = [#tpu.dimension_semantics<parallel>], iteration_bounds = array<i64: 1>, scalar_prefetch = 0 : i64, scratch_operands = 0 : i64, tpu.core_type = #tpu.core_type<tc>, window_params = [{pipeline_mode = #tpu.pipeline_mode<synchronous>, transform_indices = @transform_0, window_bounds = array<i64: 6, 1>}, {transform_indices = @transform_1, window_bounds = array<i64: 1, 1>}, {transform_indices = @transform_2, window_bounds = array<i64: 1, 256>}, {transform_indices = @transform_3, window_bounds = array<i64: 6, 256>}, {transform_indices = @transform_4, window_bounds = array<i64: 1, 256>}, {transform_indices = @transform_5, window_bounds = array<i64: 1, 8, 128>}]} {
    %c0 = arith.constant 0 : index
    %c0_0 = arith.constant 0 : index
    %0 = vector.load %arg4[%c0, %c0_0] : memref<6x256xf32, #tpu.memory_space<vmem>>, vector<6x256xf32>
    %c0_1 = arith.constant 0 : index
    %c0_2 = arith.constant 0 : index
    %1 = vector.load %arg1[%c0_1, %c0_2] : memref<6x1xf32, #tpu.memory_space<vmem>>, vector<6x1xf32>
    %2 = vector.broadcast %1 : vector<6x1xf32> to vector<6x256xf32>
    %3 = arith.mulf %0, %2 : vector<6x256xf32>
    %cst = arith.constant dense<0.000000e+00> : vector<256xf32>
    %4 = vector.multi_reduction <add>, %3, %cst [0] : vector<6x256xf32> to vector<256xf32>
    %5 = vector.shape_cast %4 : vector<256xf32> to vector<1x256xf32>
    %c0_3 = arith.constant 0 : index
    %c0_4 = arith.constant 0 : index
    %6 = vector.load %arg3[%c0_3, %c0_4] : memref<1x256xf32, #tpu.memory_space<vmem>>, vector<1x256xf32>
    %7 = arith.addf %5, %6 : vector<1x256xf32>
    %c0_5 = arith.constant 0 : index
    %c0_6 = arith.constant 0 : index
    %8 = memref.load %arg2[%c0_5, %c0_6] : memref<1x1xf32, #tpu.memory_space<smem>>
    %9 = vector.broadcast %8 : f32 to vector<1x256xf32>
    %10 = arith.addf %7, %9 : vector<1x256xf32>
    %11 = arith.negf %10 : vector<1x256xf32>
    %12 = math.exp %11 : vector<1x256xf32>
    %cst_7 = arith.constant 1.000000e+00 : f32
    %13 = vector.broadcast %cst_7 : f32 to vector<1x256xf32>
    %14 = arith.addf %13, %12 : vector<1x256xf32>
    %15 = arith.divf %13, %14 : vector<1x256xf32>
    %16 = tpu.iota {dimensions = array<i32: 1>} : vector<1x256xi32>
    %c256_i32 = arith.constant 256 : i32
    %17 = arith.muli %arg0, %c256_i32 : i32
    %18 = vector.broadcast %17 : i32 to vector<1x256xi32>
    %19 = arith.addi %18, %16 : vector<1x256xi32>
    %c256_i32_8 = arith.constant 256 : i32
    %20 = vector.broadcast %c256_i32_8 : i32 to vector<1x256xi32>
    %21 = arith.cmpi slt, %19, %20 : vector<1x256xi32>
    %cst_9 = arith.constant 0.000000e+00 : f32
    %22 = vector.broadcast %cst_9 : f32 to vector<1x256xf32>
    %23 = arith.select %21, %15, %22 : vector<1x256xi1>, vector<1x256xf32>
    %c0_10 = arith.constant 0 : index
    %c0_11 = arith.constant 0 : index
    %24 = vector.load %arg5[%c0_10, %c0_11] : memref<1x256xf32, #tpu.memory_space<vmem>>, vector<1x256xf32>
    tpu.vector_store %arg5[%c0_10, %c0_11], %23 {strides = array<i32>} : memref<1x256xf32, #tpu.memory_space<vmem>>, vector<1x256xf32>,
    %25 = vector.shape_cast %23 : vector<1x256xf32> to vector<1x1x256xf32>
    %cst_12 = arith.constant dense<0.000000e+00> : vector<1xf32>
    %26 = vector.multi_reduction <add>, %25, %cst_12 [1, 2] : vector<1x1x256xf32> to vector<1xf32>
    %27 = vector.shape_cast %26 : vector<1xf32> to vector<1x1x1xf32>
    %28 = vector.extract %27[0, 0, 0] : f32 from vector<1x1x1xf32>
    %29 = vector.broadcast %28 : f32 to vector<1x8x128xf32>
    %c0_13 = arith.constant 0 : index
    %c0_14 = arith.constant 0 : index
    %c0_15 = arith.constant 0 : index
    %30 = vector.load %arg6[%c0_13, %c0_14, %c0_15] : memref<1x8x128xf32, #tpu.memory_space<vmem>>, vector<1x8x128xf32>
    tpu.vector_store %arg6[%c0_13, %c0_14, %c0_15], %29 {strides = array<i32>} : memref<1x8x128xf32, #tpu.memory_space<vmem>>, vector<1x8x128xf32>,
    return
  }
  func.func @transform_0(%arg0: i32) -> (i32, i32) {
    %c0_i32 = arith.constant 0 : i32
    %c0_i32_0 = arith.constant 0 : i32
    %c0_i32_1 = arith.constant 0 : i32
    return %c0_i32, %c0_i32_0 : i32, i32
  }
  func.func @transform_1(%arg0: i32) -> (i32, i32) {
    %c0_i32 = arith.constant 0 : i32
    %c0_i32_0 = arith.constant 0 : i32
    %c0_i32_1 = arith.constant 0 : i32
    return %c0_i32, %c0_i32_0 : i32, i32
  }
  func.func @transform_2(%arg0: i32) -> (i32, i32) {
    %c0_i32 = arith.constant 0 : i32
    %c0_i32_0 = arith.constant 0 : i32
    return %c0_i32, %arg0 : i32, i32
  }
  func.func @transform_3(%arg0: i32) -> (i32, i32) {
    %c0_i32 = arith.constant 0 : i32
    %c0_i32_0 = arith.constant 0 : i32
    return %c0_i32, %arg0 : i32, i32
  }
  func.func @transform_4(%arg0: i32) -> (i32, i32) {
    %c0_i32 = arith.constant 0 : i32
    %c0_i32_0 = arith.constant 0 : i32
    return %c0_i32, %arg0 : i32, i32
  }
  func.func @transform_5(%arg0: i32) -> (i32, i32, i32) {
    %c0_i32 = arith.constant 0 : i32
    %c0_i32_0 = arith.constant 0 : i32
    %c0_i32_1 = arith.constant 0 : i32
    return %arg0, %c0_i32, %c0_i32_0 : i32, i32, i32
  }
}

</mosaic_0001>

<bundles_post_ra>
// kernel: tpu_custom_call.1
= control target key start
LH: loop header
LB: loop body
LE: loop exit
PB: predicated region body
PF: predicated region fallthrough
CT: control target
= control target key end

     0   :  { %12 = vsyncpa [#allocation4], 0  ;;  %s304_s0 = inlined_call_operand.vmem [shape: f32[6,1], index: 0, kind: input, shape index: {}]   ;;  %s305_s1 = inlined_call_operand.<no memory space> [shape: f32[1,1], index: 1, kind: input, shape index: {}]   ;;  %s306_s2 = inlined_call_operand.vmem [shape: f32[1,256], index: 2, kind: input, shape index: {}]   ;;  %s307_s3 = inlined_call_operand.hbm [shape: f32[6,256], index: 3, kind: input, shape index: {}]   ;;  %s308_s4 = inlined_call_operand.hbm [shape: f32[1,256], index: 4, kind: output, shape index: {0}]   ;;  %s309_s5 = inlined_call_operand.hbm [shape: f32[1,8,128], index: 5, kind: output, shape index: {1}]  }
   0x1   :  { %13 = vsyncpa [#allocation5], 0 }
   0x2   :  { %14 = vsyncpa [#allocation8], 0  ;;  %s251_s18 = smov [#allocation3]  }
   0x3   :  { %s27_s19 = sshll.u32 %s251_s18, 4  ;;  %s28_s19 = int_to_ptr.vmem [resolvable:$true] %s27_s19 }
   0x4   :  { %s193_s20 = scalar_lea.vmem %s28_s19, 256  ;;  %p198_p1 = scmp.lt.s32.totalorder %s28_s19, %s28_s19 }
   0x5   :  { %p194_p0 = scmp.ne.s32.totalorder %s28_s19, %s193_s20  ;;  %p199_p2 = scmp.lt.s32.totalorder %s193_s20, %s193_s20 }
   0x7   :  { %p200_p3 = por %p199_p2, %p198_p1 }
   0x9   :  { %p201_p4 = pnand %p200_p3, %p194_p0 }
   0xb   :  { %204 = shalt.err (!%p201_p4)
}
   0xc   :  { %30 = dma.hbm_to_vmem [thread:$0]  %s307_s3, 256, %s28_s19, [#allocation4]  }
   0xd   :  { %245 = dma.done.wait [#allocation4], 256  }
   0xe   :  { %246 = vsyncadd [#allocation4], 4294967040  ;;  %v252_v0 = vmov 0   ;;  %v36_v1 = vld [vmem:[%s304_s0] sm:$0x3f]  ;;  %vm44_vm0 = vcmask 1045504   ;;  %v61_v4 = vlaneseq  ;;  %v74_v28 = vstv %s305_s1 }
   0xf   :  { %176 = vset.pattern.permute.xlu0 %v252_v0  ;;  %v34_v2 = vld [vmem:[#allocation3] sm:$0x3f]  ;;  %v35_v3 = vld [vmem:[#allocation3 + $0x8] sm:$0x3f]  ;;  %v253_v39 = vmov 1966171168  }
  0x10   :  { %39 = vperm.xlu0 %176, %v36_v1   ;;  %v62_v10 = vshrl.u32 %v61_v4, 7  ;;  %v59_v19 = vld [vmem:[%s306_s2] sm:$0x3]  ;;  %v104_v40 = vunpack.c.l.s4 %v253_v39  ;;  %vm123_vm1 = vcmask 1040384   ;;  %vm120_vm2 = vcmp.lt.s32.totalorder %v61_v4, 256  ;;  %s254_s1 = smov [#allocation6]  }
  0x11   :  { %s144_s2 = sshll.u32 %s254_s1, 4  ;;  %s145_s2 = int_to_ptr.vmem [resolvable:$true] %s144_s2 }
  0x12   :  { %v63_v15 = vsub.s32 0, %v62_v10  ;;  %v67_v16 = vsub.s32 1, %v62_v10  ;;  %v105_v41 = vunpack.c.0.s8 %v104_v40  ;;  %s205_s27 = scalar_lea.vmem %s145_s2, 32  ;;  %p210_p6 = scmp.lt.s32.totalorder %s145_s2, %s145_s2 }
  0x13   :  { %p206_p5 = scmp.ne.s32.totalorder %s145_s2, %s205_s27  ;;  %p211_p7 = scmp.lt.s32.totalorder %s205_s27, %s205_s27 }
  0x14   :  { %v64_v22 = vrot.slane %v59_v19, %v63_v15  ;;  %v68_v23 = vrot.slane %v59_v19, %v67_v16  ;;  %v108_v43 = vsub.s32 %v105_v41, %v62_v10 }
  0x15   :  { %p212_p8 = por %p211_p7, %p210_p6 }
  0x17   :  { %p213_p9 = pnand %p212_p8, %p206_p5 }
  0x8b   :  { %v40_v5 = vpop.permute.xlu0 %39 }
  0x8c   :  { %v42_v6 = vmul.f32 %v40_v5, %v34_v2  ;;  %v43_v7 = vmul.f32 %v40_v5, %v35_v3 }
  0x8e   :  { %v45_v8 = vsel %vm44_vm0, %v42_v6, 0.0  ;;  %v52_v9 = vsel %vm44_vm0, %v43_v7, 0.0 }
  0x8f   :  { %v46_v11 = vrot.slane %v45_v8, 4  ;;  %v53_v12 = vrot.slane %v52_v9, 4 }
  0x91   :  { %v47_v13 = vadd.f32 %v46_v11, %v45_v8  ;;  %v54_v14 = vadd.f32 %v53_v12, %v52_v9 }
  0x93   :  { %v48_v17 = vrot.slane %v47_v13, 2  ;;  %v55_v18 = vrot.slane %v54_v14, 2 }
  0x95   :  { %v49_v20 = vadd.f32 %v48_v17, %v47_v13  ;;  %v56_v21 = vadd.f32 %v55_v18, %v54_v14 }
  0x97   :  { %v50_v24 = vrot.slane %v49_v20, 1  ;;  %v57_v25 = vrot.slane %v56_v21, 1 }
  0x99   :  { %v51_v26 = vadd.f32 %v50_v24, %v49_v20  ;;  %v58_v27 = vadd.f32 %v57_v25, %v56_v21 }
  0x9b   :  { %v71_v29 = vadd.f32 %v64_v22, %v51_v26  ;;  %v72_v30 = vadd.f32 %v68_v23, %v58_v27 }
  0x9d   :  { %v75_v31 = vadd.f32 %v74_v28, %v71_v29  ;;  %v76_v32 = vadd.f32 %v74_v28, %v72_v30 }
  0x9f   :  { %v167_v33 = vmul.f32 -1.442695, %v75_v31  ;;  %v168_v34 = vmul.f32 -1.442695, %v76_v32 }
  0xa1   :  { %177 = vpow2.f32 %v167_v33 }
  0xa2   :  { %179 = vpow2.f32 %v168_v34 }
  0xae   :  { %v178_v35 = vpop.eup %177 }
  0xaf   :  { %v180_v36 = vpop.eup %179  ;;  %v83_v37 = vadd.f32 1.0, %v178_v35 }
  0xb0   :  { %v84_v38 = vadd.f32 1.0, %v180_v36 }
  0xb1   :  { %181 = vrcp.f32 %v83_v37 }
  0xb2   :  { %183 = vrcp.f32 %v84_v38 }
  0xbe   :  { %v182_v42 = vpop.eup %181 }
  0xbf   :  { %v184_v44 = vpop.eup %183  ;;  %v124_v45 = vsel %vm123_vm1, %v182_v42, 0.0 }
  0xc0   :  { %v125_v46 = vsel %vm123_vm1, %v184_v44, 0.0  ;;  %v102_v47 = vcombine.low %v182_v42, %v184_v44 }
  0xc1   :  { %v126_v48 = vadd.f32 %v125_v46, %v124_v45 }
  0xc2   :  { %v109_v49 = vrot.slane %v102_v47, %v108_v43 }
  0xc3   :  { %127 = vadd.xlane.f32.xlu0 %v126_v48 }
  0xc4   :  { %v116_v50 = vrot.slane %v109_v49, %v108_v43 }
  0xc6   :  { %122 = vst.msk [vmem:[#allocation6] sm:$0x3] %vm120_vm2, %v116_v50 }
  0xc7   :  { %216 = shalt.err (!%p213_p9)
}
  0xc8   :  { %147 = dma.vmem_to_hbm [thread:$0]  %s145_s2, 32, %s308_s4, [#allocation5]  }
  0xc9   :  { %s255_s30 = smov [#allocation7]  }
  0xca   :  { %s154_s6 = sshll.u32 %s255_s30, 4  ;;  %s155_s6 = int_to_ptr.vmem [resolvable:$true] %s154_s6 }
  0xcb   :  { %s225_s8 = scalar_lea.vmem %s155_s6, 128  ;;  %p230_p11 = scmp.lt.s32.totalorder %s155_s6, %s155_s6 }
  0xcc   :  { %p226_p10 = scmp.ne.s32.totalorder %s155_s6, %s225_s8  ;;  %p231_p12 = scmp.lt.s32.totalorder %s225_s8, %s225_s8 }
  0xce   :  { %p232_p13 = por %p231_p12, %p230_p11 }
  0xd0   :  { %p233_p0 = pnand %p232_p13, %p226_p10 }
 0x14c   :  { %v128_v51 = vpop.xlane.xlu0 %127 }
 0x14d   :  { %v129_v52 = vrot.slane %v128_v51, 4 }
 0x14f   :  { %v130_v53 = vadd.f32 %v129_v52, %v128_v51 }
 0x151   :  { %v131_v54 = vrot.slane %v130_v53, 2 }
 0x153   :  { %v132_v55 = vadd.f32 %v131_v54, %v130_v53 }
 0x155   :  { %v133_v56 = vrot.slane %v132_v55, 1 }
 0x157   :  { %v134_v57 = vadd.f32 %v133_v56, %v132_v55 }
 0x159   :  { %169 = vpush %v134_v57 }
 0x18a   :  { %s170_s7 = spop %169 }
 0x18b   :  { %v136_v58 = vstv %s170_s7 }
 0x18c   :  { %137 = vst [vmem:[#allocation7] sm:$0xff] %v136_v58 }
 0x18d   :  { %236 = shalt.err (!%p233_p0)
}
 0x18e   :  { %157 = dma.vmem_to_hbm [thread:$0]  %s155_s6, 128, %s309_s5, [#allocation8]  }
 0x18f   :  { %247 = dma.done.wait [#allocation5], 32  }
 0x190   :  { %248 = vsyncadd [#allocation5], 4294967264 }
 0x191   :  { %249 = dma.done.wait [#allocation8], 128  }
 0x192   :  { %250 = vsyncadd [#allocation8], 4294967168 }
 0x193   :  { %164 = vsyncpa [#allocation4], 1 }
 0x194   :  { %165 = vsyncpa [#allocation5], 1 }
 0x195   :  { %166 = vsyncpa [#allocation8], 1 }

</bundles_post_ra>
